<compile_context>
chip_gen: v5e
topology: v5e:2x2
jax: 0.10.0
libtpu: 0.0.40
codegen_flags: <defaults>
</compile_context>

<pallas_src>
import jax
import jax.numpy as jnp
from jax import lax
from jax.experimental import pallas as pl
from jax.experimental.pallas import tpu as pltpu


def _cdiv(a, b):
    return -(-a // b)


def _round_up(x, m):
    return ((x + m - 1) // m) * m


def _round_down(x, m):
    return (x // m) * m


def _tpu_hw_params():
    """Best-effort (tensorcores_per_chip, physical_vmem_bytes_per_core)."""
    num_cores = 1
    vmem_cap = 64 * 1024 * 1024  # conservative floor (v7x per-TC VMEM)
    try:
        info = pltpu.get_tpu_info()
        cap = getattr(info, "vmem_capacity_bytes", None)
        if cap:
            vmem_cap = int(cap)
    except Exception:
        pass
    try:
        kind = jax.devices()[0].device_kind.lower()
        # 2 TensorCores per chip/device: v7x and the megacore chips (v4, v5p).
        if ("v7" in kind) or ("v4" in kind) or ("v5p" in kind):
            num_cores = 2
    except Exception:
        pass
    return num_cores, vmem_cap


def _make_jaccard_kernel(num_chunks, residual, steps_per_core, padded_steps):
    """residual = #valid lanes in the (global) last feature chunk (0 = full);
    padded_steps = True when num_parallel*steps_per_core > num_chunks (some
    grid steps carry no real work and must be skipped)."""
    last_step = steps_per_core - 1

    def kernel(o_ref, t_ref, inter_out, union_out, inter_acc, union_acc):
        p = pl.program_id(0)
        k = pl.program_id(1)

        @pl.when(k == 0)
        def _init():
            inter_acc[...] = jnp.zeros_like(inter_acc)
            union_acc[...] = jnp.zeros_like(union_acc)

        # Pure elementwise VPU work; accumulate into full-block int32 scratch.
        o = o_ref[...] > 0.5
        t = t_ref[...] > 0.5
        inter = (o & t).astype(jnp.int32)
        union = (o | t).astype(jnp.int32)

        g = p * steps_per_core + k  # global chunk index

        def accum_full():
            inter_acc[...] += inter
            union_acc[...] += union

        def accum_tail():
            lane = lax.broadcasted_iota(jnp.int32, inter.shape, 1)
            valid = lane < residual
            inter_acc[...] += jnp.where(valid, inter, 0)
            union_acc[...] += jnp.where(valid, union, 0)

        if residual == 0 and not padded_steps:
            accum_full()
        elif residual == 0:
            # Skip padded (no-work) steps; all real chunks are full.
            pl.when(g < num_chunks)(accum_full)
        else:
            # Ragged tail (and possibly padded steps, which fall through both
            # gates and contribute nothing).
            pl.when(g < num_chunks - 1)(accum_full)
            pl.when(g == num_chunks - 1)(accum_tail)

        @pl.when(k == last_step)
        def _finalize():
            # Single cross-lane reduce + narrow store per core per sweep.
            inter_out[...] = jnp.sum(inter_acc[...], axis=1, keepdims=True)
            union_out[...] = jnp.sum(union_acc[...], axis=1, keepdims=True)

    return kernel


@jax.jit
def jaccard_loss(output, target):
    """Pallas equivalent of JaccardLoss.forward(output, target) (NCHW)."""
    assert output.shape == target.shape
    n = int(output.shape[0])
    f = 1
    for d in output.shape[1:]:
        f *= int(d)

    num_cores, vmem_cap = _tpu_hw_params()

    # --- sublane packing for small batches: (N, F) -> (N*r, F/r) -------------
    r = 1
    if n < 8 and f >= 256:
        for cand in (8, 4, 2):
            if f % cand == 0 and (f // cand) >= 128:
                r = cand
                break
    # TODO(synk): when n < 8 and f has no divisor in {8,4,2}, sublanes stay
    # underfilled; a per-row tail mask would lift the f % r == 0 requirement.
    rows = n * r
    f_row = f // r

    o2 = output.reshape(rows, f_row)
    t2 = target.reshape(rows, f_row)

    # Only for microscopic feature counts (< 128 lanes) pad to one lane tile;
    # zeros are inert under the >0.5 threshold.  Real sizes never pad.
    if f_row < 128:
        pad = 128 - f_row
        o2 = jnp.pad(o2, ((0, 0), (0, pad)))
        t2 = jnp.pad(t2, ((0, 0), (0, pad)))
        f_row = 128

    # --- feature-chunk sizing: ~4 MiB f32 per input block, 128-lane multiple,
    # --- balanced so the last chunk is not a tiny masked residual ------------
    target_elems = (4 * 1024 * 1024) // 4
    f_cap = _round_down(f_row, 128)
    chunk_max = max(128, min(_round_down(target_elems // rows, 128), f_cap))
    n_min = _cdiv(f_row, chunk_max)
    chunk = min(_round_up(_cdiv(f_row, n_min), 128), chunk_max)
    num_chunks = _cdiv(f_row, chunk)
    residual = f_row - (num_chunks - 1) * chunk
    if residual == chunk:
        residual = 0

    # --- split the reduction (chunk) axis across TensorCores on 2-TC chips ---
    num_parallel = num_cores if (num_cores > 1 and num_chunks >= 2) else 1
    steps_per_core = _cdiv(num_chunks, num_parallel)
    padded_steps = num_parallel * steps_per_core > num_chunks

    if padded_steps:
        def feat_map(p, k):
            return (0, jnp.minimum(p * steps_per_core + k, num_chunks - 1))
    else:
        def feat_map(p, k):
            return (0, p * steps_per_core + k)

    # 2 inputs double-buffered + 2 int32 accumulators (+ tiny output buffers).
    est_vmem = (2 * 2 + 2) * rows * chunk * 4 + 4 * num_parallel * rows * 4
    budget = (vmem_cap * 3) // 4  # leave >= 25% headroom of physical VMEM
    vmem_limit = int(max(32 * 1024 * 1024,
                         min(budget, est_vmem * 3 // 2 + (2 << 20))))

    kernel = _make_jaccard_kernel(num_chunks, residual, steps_per_core,
                                  padded_steps)

    cost = pl.CostEstimate(
        flops=8 * rows * f_row,
        transcendentals=0,
        bytes_accessed=2 * rows * f_row * 4 + 2 * num_parallel * rows * 4,
    )

    inter_parts, union_parts = pl.pallas_call(
        kernel,
        out_shape=(
            jax.ShapeDtypeStruct((num_parallel, rows, 1), jnp.int32),
            jax.ShapeDtypeStruct((num_parallel, rows, 1), jnp.int32),
        ),
        grid_spec=pltpu.PrefetchScalarGridSpec(
            num_scalar_prefetch=0,
            grid=(num_parallel, steps_per_core),
            in_specs=[
                pl.BlockSpec((rows, chunk), feat_map),
                pl.BlockSpec((rows, chunk), feat_map),
            ],
            out_specs=[
                pl.BlockSpec((None, rows, 1), lambda p, k: (p, 0, 0)),
                pl.BlockSpec((None, rows, 1), lambda p, k: (p, 0, 0)),
            ],
            scratch_shapes=[
                pltpu.VMEM((rows, chunk), jnp.int32),  # intersection acc
                pltpu.VMEM((rows, chunk), jnp.int32),  # union acc
            ],
        ),
        compiler_params=pltpu.CompilerParams(
            dimension_semantics=("parallel", "arbitrary"),
            vmem_limit_bytes=vmem_limit,
        ),
        cost_estimate=cost,
    )(o2, t2)

    # Tiny epilogue: fold per-core partials and the r packed rows per sample.
    inter = jnp.sum(inter_parts, axis=0)  # (rows, 1)
    union = jnp.sum(union_parts, axis=0)
    inter = jnp.sum(inter.reshape(n, r), axis=1).astype(jnp.float32)
    union = jnp.sum(union.reshape(n, r), axis=1).astype(jnp.float32)
    jac = (inter + 1e-06) / (union + 1e-06)
    return 1.0 - jnp.mean(jac)


def _jaccard_loss_ref(output, target):
    o = output > 0.5
    t = target > 0.5
    inter = jnp.sum((o & t).astype(jnp.float32), axis=(1, 2, 3))
    union = jnp.sum((o | t).astype(jnp.float32), axis=(1, 2, 3))
    jac = (inter + 1e-06) / (union + 1e-06)
    return 1.0 - jnp.mean(jac)


if __name__ == "__main__":
    key = jax.random.PRNGKey(0)
    k1, k2, k3, k4, k5, k6 = jax.random.split(key, 6)

    # NCHW, matching the PyTorch module's expected layout.
    x = jax.random.uniform(k1, (2, 4, 16, 16), dtype=jnp.float32)
    y = jax.random.uniform(k2, (2, 4, 16, 16), dtype=jnp.float32)
    loss = jaccard_loss(x, y)
    jax.block_until_ready(loss)
    ref = _jaccard_loss_ref(x, y)
    assert jnp.allclose(loss, ref, atol=1e-6, rtol=1e-6), (loss, ref)

    # Ragged feature count: multi-chunk sweep + in-kernel tail mask + (on
    # 2-TC chips) the feature-axis core split.
    x2 = jax.random.uniform(k3, (2, 4, 24, 24), dtype=jnp.float32)
    y2 = jax.random.uniform(k4, (2, 4, 24, 24), dtype=jnp.float32)
    loss2 = jaccard_loss(x2, y2)
    jax.block_until_ready(loss2)
    ref2 = _jaccard_loss_ref(x2, y2)
    assert jnp.allclose(loss2, ref2, atol=1e-6, rtol=1e-6), (loss2, ref2)

    # Odd batch / non-power-of-two features: different packing, ragged tail.
    x3 = jax.random.uniform(k5, (3, 5, 20, 20), dtype=jnp.float32)
    y3 = jax.random.uniform(k6, (3, 5, 20, 20), dtype=jnp.float32)
    loss3 = jaccard_loss(x3, y3)
    jax.block_until_ready(loss3)
    ref3 = _jaccard_loss_ref(x3, y3)
    assert jnp.allclose(loss3, ref3, atol=1e-6, rtol=1e-6), (loss3, ref3)

    print("KERNEL_OK")
</pallas_src>

<mosaic_0001>
module attributes {stable_mosaic.version = 11 : i64} {
  func.func @kernel(%arg0: i32, %arg1: i32, %arg2: memref<16x128xf32, #tpu.memory_space<vmem>>, %arg3: memref<16x128xf32, #tpu.memory_space<vmem>>, %arg4: memref<1x16x1xi32, #tpu.memory_space<vmem>>, %arg5: memref<1x16x1xi32, #tpu.memory_space<vmem>>, %arg6: memref<16x128xi32, #tpu.memory_space<vmem>>, %arg7: memref<16x128xi32, #tpu.memory_space<vmem>>) attributes {dimension_semantics = [#tpu.dimension_semantics<parallel>, #tpu.dimension_semantics<arbitrary>], iteration_bounds = array<i64: 1, 1>, scalar_prefetch = 0 : i64, scratch_operands = 2 : i64, tpu.core_type = #tpu.core_type<tc>, window_params = [{transform_indices = @transform_0, window_bounds = array<i64: 16, 128>}, {transform_indices = @transform_1, window_bounds = array<i64: 16, 128>}, {transform_indices = @transform_2, window_bounds = array<i64: 1, 16, 1>}, {transform_indices = @transform_3, window_bounds = array<i64: 1, 16, 1>}]} {
    %c0_i32 = arith.constant 0 : i32
    %0 = arith.cmpi eq, %arg1, %c0_i32 : i32
    %1 = arith.extui %0 : i1 to i32
    %c0_i32_0 = arith.constant 0 : i32
    %2 = arith.cmpi ne, %1, %c0_i32_0 : i32
    scf.if %2 {
      %c0_i32_15 = arith.constant 0 : i32
      %22 = vector.broadcast %c0_i32_15 : i32 to vector<16x128xi32>
      %c0_16 = arith.constant 0 : index
      %c0_17 = arith.constant 0 : index
      %23 = vector.load %arg6[%c0_16, %c0_17] : memref<16x128xi32, #tpu.memory_space<vmem>>, vector<16x128xi32>
      tpu.vector_store %arg6[%c0_16, %c0_17], %22 {strides = array<i32>} : memref<16x128xi32, #tpu.memory_space<vmem>>, vector<16x128xi32>,
      %c0_i32_18 = arith.constant 0 : i32
      %24 = vector.broadcast %c0_i32_18 : i32 to vector<16x128xi32>
      %c0_19 = arith.constant 0 : index
      %c0_20 = arith.constant 0 : index
      %25 = vector.load %arg7[%c0_19, %c0_20] : memref<16x128xi32, #tpu.memory_space<vmem>>, vector<16x128xi32>
      tpu.vector_store %arg7[%c0_19, %c0_20], %24 {strides = array<i32>} : memref<16x128xi32, #tpu.memory_space<vmem>>, vector<16x128xi32>,
    } else {
    }
    %c0 = arith.constant 0 : index
    %c0_1 = arith.constant 0 : index
    %3 = vector.load %arg2[%c0, %c0_1] : memref<16x128xf32, #tpu.memory_space<vmem>>, vector<16x128xf32>
    %cst = arith.constant 5.000000e-01 : f32
    %4 = vector.broadcast %cst : f32 to vector<16x128xf32>
    %5 = arith.cmpf ogt, %3, %4 : vector<16x128xf32>
    %c0_2 = arith.constant 0 : index
    %c0_3 = arith.constant 0 : index
    %6 = vector.load %arg3[%c0_2, %c0_3] : memref<16x128xf32, #tpu.memory_space<vmem>>, vector<16x128xf32>
    %cst_4 = arith.constant 5.000000e-01 : f32
    %7 = vector.broadcast %cst_4 : f32 to vector<16x128xf32>
    %8 = arith.cmpf ogt, %6, %7 : vector<16x128xf32>
    %9 = arith.andi %5, %8 : vector<16x128xi1>
    %10 = arith.extui %9 : vector<16x128xi1> to vector<16x128xi32>
    %11 = arith.ori %5, %8 : vector<16x128xi1>
    %12 = arith.extui %11 : vector<16x128xi1> to vector<16x128xi32>
    %c0_5 = arith.constant 0 : index
    %c0_6 = arith.constant 0 : index
    %13 = vector.load %arg6[%c0_5, %c0_6] : memref<16x128xi32, #tpu.memory_space<vmem>>, vector<16x128xi32>
    %14 = arith.addi %13, %10 : vector<16x128xi32>
    %c0_7 = arith.constant 0 : index
    %c0_8 = arith.constant 0 : index
    %15 = vector.load %arg6[%c0_7, %c0_8] : memref<16x128xi32, #tpu.memory_space<vmem>>, vector<16x128xi32>
    tpu.vector_store %arg6[%c0_7, %c0_8], %14 {strides = array<i32>} : memref<16x128xi32, #tpu.memory_space<vmem>>, vector<16x128xi32>,
    %c0_9 = arith.constant 0 : index
    %c0_10 = arith.constant 0 : index
    %16 = vector.load %arg7[%c0_9, %c0_10] : memref<16x128xi32, #tpu.memory_space<vmem>>, vector<16x128xi32>
    %17 = arith.addi %16, %12 : vector<16x128xi32>
    %c0_11 = arith.constant 0 : index
    %c0_12 = arith.constant 0 : index
    %18 = vector.load %arg7[%c0_11, %c0_12] : memref<16x128xi32, #tpu.memory_space<vmem>>, vector<16x128xi32>
    tpu.vector_store %arg7[%c0_11, %c0_12], %17 {strides = array<i32>} : memref<16x128xi32, #tpu.memory_space<vmem>>, vector<16x128xi32>,
    %c0_i32_13 = arith.constant 0 : i32
    %19 = arith.cmpi eq, %arg1, %c0_i32_13 : i32
    %20 = arith.extui %19 : i1 to i32
    %c0_i32_14 = arith.constant 0 : i32
    %21 = arith.cmpi ne, %20, %c0_i32_14 : i32
    scf.if %21 {
      %c0_15 = arith.constant 0 : index
      %c0_16 = arith.constant 0 : index
      %22 = vector.load %arg6[%c0_15, %c0_16] : memref<16x128xi32, #tpu.memory_space<vmem>>, vector<16x128xi32>
      %cst_17 = arith.constant dense<0> : vector<16xi32>
      %23 = vector.multi_reduction <add>, %22, %cst_17 [1] : vector<16x128xi32> to vector<16xi32>
      %24 = vector.shape_cast %23 : vector<16xi32> to vector<16x1xi32>
      %c0_18 = arith.constant 0 : index
      %c0_19 = arith.constant 0 : index
      %c0_20 = arith.constant 0 : index
      %25 = vector.load %arg4[%c0_18, %c0_19, %c0_20] : memref<1x16x1xi32, #tpu.memory_space<vmem>>, vector<1x16x1xi32>
      %26 = vector.shape_cast %25 : vector<1x16x1xi32> to vector<16x1xi32>
      %27 = vector.shape_cast %24 : vector<16x1xi32> to vector<1x16x1xi32>
      tpu.vector_store %arg4[%c0_18, %c0_19, %c0_20], %27 {strides = array<i32>} : memref<1x16x1xi32, #tpu.memory_space<vmem>>, vector<1x16x1xi32>,
      %c0_21 = arith.constant 0 : index
      %c0_22 = arith.constant 0 : index
      %28 = vector.load %arg7[%c0_21, %c0_22] : memref<16x128xi32, #tpu.memory_space<vmem>>, vector<16x128xi32>
      %cst_23 = arith.constant dense<0> : vector<16xi32>
      %29 = vector.multi_reduction <add>, %28, %cst_23 [1] : vector<16x128xi32> to vector<16xi32>
      %30 = vector.shape_cast %29 : vector<16xi32> to vector<16x1xi32>
      %c0_24 = arith.constant 0 : index
      %c0_25 = arith.constant 0 : index
      %c0_26 = arith.constant 0 : index
      %31 = vector.load %arg5[%c0_24, %c0_25, %c0_26] : memref<1x16x1xi32, #tpu.memory_space<vmem>>, vector<1x16x1xi32>
      %32 = vector.shape_cast %31 : vector<1x16x1xi32> to vector<16x1xi32>
      %33 = vector.shape_cast %30 : vector<16x1xi32> to vector<1x16x1xi32>
      tpu.vector_store %arg5[%c0_24, %c0_25, %c0_26], %33 {strides = array<i32>} : memref<1x16x1xi32, #tpu.memory_space<vmem>>, vector<1x16x1xi32>,
    } else {
    }
    return
  }
  func.func @transform_0(%arg0: i32, %arg1: i32) -> (i32, i32) {
    %c1_i32 = arith.constant 1 : i32
    %0 = arith.muli %arg0, %c1_i32 : i32
    %1 = arith.addi %0, %arg1 : i32
    %c0_i32 = arith.constant 0 : i32
    %c0_i32_0 = arith.constant 0 : i32
    return %c0_i32, %1 : i32, i32
  }
  func.func @transform_1(%arg0: i32, %arg1: i32) -> (i32, i32) {
    %c1_i32 = arith.constant 1 : i32
    %0 = arith.muli %arg0, %c1_i32 : i32
    %1 = arith.addi %0, %arg1 : i32
    %c0_i32 = arith.constant 0 : i32
    %c0_i32_0 = arith.constant 0 : i32
    return %c0_i32, %1 : i32, i32
  }
  func.func @transform_2(%arg0: i32, %arg1: i32) -> (i32, i32, i32) {
    %c0_i32 = arith.constant 0 : i32
    %c0_i32_0 = arith.constant 0 : i32
    %c0_i32_1 = arith.constant 0 : i32
    return %arg0, %c0_i32, %c0_i32_0 : i32, i32, i32
  }
  func.func @transform_3(%arg0: i32, %arg1: i32) -> (i32, i32, i32) {
    %c0_i32 = arith.constant 0 : i32
    %c0_i32_0 = arith.constant 0 : i32
    %c0_i32_1 = arith.constant 0 : i32
    return %arg0, %c0_i32, %c0_i32_0 : i32, i32, i32
  }
}

</mosaic_0001>

<bundles_post_ra>
// kernel: jaccard_loss.1
= control target key start
LH: loop header
LB: loop body
LE: loop exit
PB: predicated region body
PF: predicated region fallthrough
CT: control target
= control target key end

     0   :  { %v164_v4 = vmov 0   ;;  %vm112_vm8 = vcmask 7168   ;;  %s213_s0 = inlined_call_operand.vmem [shape: f32[16,128], index: 0, kind: input, shape index: {}]   ;;  %s214_s1 = inlined_call_operand.vmem [shape: f32[16,128], index: 1, kind: input, shape index: {}]   ;;  %s215_s2 = inlined_call_operand.vmem [shape: s32[1,16,1], index: 2, kind: output, shape index: {0}]   ;;  %s216_s3 = inlined_call_operand.vmem [shape: s32[1,16,1], index: 3, kind: output, shape index: {1}]  }
   0x1   :  { %v55_v0 = vld [vmem:[%s213_s0] sm:$0xff]  ;;  %v56_v2 = vld [vmem:[%s213_s0 + $0x8] sm:$0xff] }
   0x2   :  { %v59_v1 = vld [vmem:[%s214_s1] sm:$0xff]  ;;  %vm57_vm0 = vcmp.gt.f32.partialorder %v55_v0, 0.5  ;;  %vm58_vm2 = vcmp.gt.f32.partialorder %v56_v2, 0.5  ;;  %v60_v3 = vld [vmem:[%s214_s1 + $0x8] sm:$0xff] }
   0x3   :  { %vm61_vm1 = vcmp.gt.f32.partialorder %v59_v1, 0.5  ;;  %vm62_vm4 = vcmp.gt.f32.partialorder %v60_v3, 0.5 }
   0x4   :  { %vm67_vm3 = vmor %vm57_vm0, %vm61_vm1 }
   0x5   :  { %v69_v5 = vsel %vm67_vm3, 1, %v164_v4  ;;  %vm63_vm5 = vmand %vm57_vm0, %vm61_vm1 }
   0x6   :  { %v118_v6 = vshrl.u32 %v69_v5, 16  ;;  %v65_v7 = vsel %vm63_vm5, 1, %v164_v4  ;;  %vm68_vm6 = vmor %vm58_vm2, %vm62_vm4  ;;  %v117_v22 = vand.u32 65535, %v69_v5 }
   0x7   :  { %v89_v8 = vshrl.u32 %v65_v7, 16  ;;  %v88_v9 = vand.u32 65535, %v65_v7  ;;  %v70_v10 = vsel %vm68_vm6, 1, %v164_v4  ;;  %vm64_vm7 = vmand %vm58_vm2, %vm62_vm4 }
   0x8   :  { %v120_v11 = vcvt.s32.f32 %v118_v6  ;;  %v66_v12 = vsel %vm64_vm7, 1, %v164_v4  ;;  %v130_v15 = vshrl.u32 %v70_v10, 16  ;;  %v129_v21 = vand.u32 65535, %v70_v10 }
   0x9   :  { %v91_v13 = vcvt.s32.f32 %v89_v8  ;;  %v90_v14 = vcvt.s32.f32 %v88_v9  ;;  %v101_v16 = vshrl.u32 %v66_v12, 16  ;;  %v100_v17 = vand.u32 65535, %v66_v12 }
   0xa   :  { %123 = vadd.xlane.f32.xlu1 %v120_v11  ;;  %v132_v18 = vcvt.s32.f32 %v130_v15  ;;  %v131_v23 = vcvt.s32.f32 %v129_v21  ;;  %v119_v24 = vcvt.s32.f32 %v117_v22 }
   0xb   :  { %94 = vadd.xlane.f32.xlu0 %v91_v13  ;;  %92 = vadd.xlane.f32.xlu2 %v90_v14  ;;  %v103_v19 = vcvt.s32.f32 %v101_v16  ;;  %v102_v20 = vcvt.s32.f32 %v100_v17 }
  0x12   :  { %135 = vadd.xlane.f32.xlu1 %v132_v18 }
  0x13   :  { %106 = vadd.xlane.f32.xlu0 %v103_v19  ;;  %104 = vadd.xlane.f32.xlu2 %v102_v20 }
  0x1a   :  { %133 = vadd.xlane.f32.xlu1 %v131_v23 }
  0x1b   :  { %121 = vadd.xlane.f32.xlu0 %v119_v24 }
  0x7d   :  { %v124_v25 = vpop.xlane.xlu1 %123 }
  0x7e   :  { %v95_v26 = vpop.xlane.xlu0 %94  ;;  %v93_v27 = vpop.xlane.xlu2 %92  ;;  %v126_v39 = vcvt.f32.s32 %v124_v25 }
  0x7f   :  { %v97_v28 = vcvt.f32.s32 %v95_v26  ;;  %v96_v29 = vcvt.f32.s32 %v93_v27 }
  0x80   :  { %v127_v45 = vshll.u32 %v126_v39, 16 }
  0x81   :  { %v98_v30 = vshll.u32 %v97_v28, 16 }
  0x83   :  { %v99_v31 = vadd.s32 %v98_v30, %v96_v29 }
  0x85   :  { %113 = vst.msk [vmem:[%s215_s2] sm:$0xff] %vm112_vm8, %v99_v31  ;;  %v136_v32 = vpop.xlane.xlu1 %135 }
  0x86   :  { %v107_v33 = vpop.xlane.xlu0 %106  ;;  %v105_v34 = vpop.xlane.xlu2 %104  ;;  %v138_v38 = vcvt.f32.s32 %v136_v32 }
  0x87   :  { %v109_v35 = vcvt.f32.s32 %v107_v33  ;;  %v108_v36 = vcvt.f32.s32 %v105_v34 }
  0x88   :  { %v139_v42 = vshll.u32 %v138_v38, 16 }
  0x89   :  { %v110_v37 = vshll.u32 %v109_v35, 16 }
  0x8b   :  { %v111_v40 = vadd.s32 %v110_v37, %v108_v36 }
  0x8d   :  { %114 = vst.msk [vmem:[%s215_s2 + $0x8] sm:$0xff] %vm112_vm8, %v111_v40  ;;  %v134_v41 = vpop.xlane.xlu1 %133 }
  0x8e   :  { %v137_v43 = vcvt.f32.s32 %v134_v41  ;;  %v122_v44 = vpop.xlane.xlu0 %121 }
  0x8f   :  { %v125_v46 = vcvt.f32.s32 %v122_v44 }
  0x90   :  { %v140_v47 = vadd.s32 %v139_v42, %v137_v43 }
  0x91   :  { %v128_v48 = vadd.s32 %v127_v45, %v125_v46 }
  0x92   :  { %142 = vst.msk [vmem:[%s216_s3 + $0x8] sm:$0xff] %vm112_vm8, %v140_v47 }
  0x93   :  { %141 = vst.msk [vmem:[%s216_s3] sm:$0xff] %vm112_vm8, %v128_v48 }

</bundles_post_ra>
